<compile_context>
chip_gen: v5e
topology: v5e:2x2
jax: 0.10.0
libtpu: 0.0.40
codegen_flags: <defaults>
</compile_context>

<pallas_src>
import jax
import jax.numpy as jnp
from jax.experimental import pallas as pl
from jax.experimental.pallas import tpu as pltpu

_SUBLANE = 8      # batch tile must be a multiple of this
_TB_MAX = 1024    # max rows per batch tile (sweepable: 512/1024/2048)


def _round_up(n, m):
    return ((n + m - 1) // m) * m


def _num_tensorcores_per_chip():
    """Best-effort chip detection: v7x has 2 TensorCores/chip, v5e/v6e have 1."""
    try:
        kind = jax.devices()[0].device_kind.lower()
    except Exception:
        return 1
    return 2 if "v7" in kind else 1


def _choose_batch_tiling(batch, cores):
    """Balanced batch tiles.

    Returns (tile_rows, padded_batch, n_tiles) with tile_rows a multiple of 8,
    tile_rows <= ~_TB_MAX, and at least `cores` tiles when the batch is big enough
    so every TensorCore gets work on megacore chips.
    """
    b8 = _round_up(max(batch, 1), _SUBLANE)
    n_tiles = pl.cdiv(b8, _TB_MAX)
    if cores > 1 and batch >= 2 * _SUBLANE:
        n_tiles = max(n_tiles, cores)
    tb = _round_up(pl.cdiv(batch, n_tiles), _SUBLANE)
    return tb, n_tiles * tb, n_tiles


def _mlp3_kernel(x_ref, w1_ref, b1_ref, w2_ref, b2_ref, w3_ref, b3_ref, o_ref):
    # One straight-line fused body per batch tile: 3 matmuls + 2 ReLUs.
    x = x_ref[...]
    h1 = jnp.maximum(
        jnp.dot(x, w1_ref[...], preferred_element_type=jnp.float32) + b1_ref[...], 0.0)
    h2 = jnp.maximum(
        jnp.dot(h1, w2_ref[...], preferred_element_type=jnp.float32) + b2_ref[...], 0.0)
    out = jnp.dot(h2, w3_ref[...], preferred_element_type=jnp.float32) + b3_ref[...]
    o_ref[...] = out.astype(o_ref.dtype)


def simple_nn3_forward(x, params):
    """x: [B, inp_dim] float32.  params: dict from init_params.  Returns [B, out_dim]."""
    B, inp_dim = x.shape
    w1t, b1 = params["w1t"], params["b1"]
    w2t, b2 = params["w2t"], params["b2"]
    w3t, b3 = params["w3t"], params["b3"]
    hid = w1t.shape[1]
    hid2 = w2t.shape[1]
    out_dim = w3t.shape[1]

    tb, b_pad, n_tiles = _choose_batch_tiling(B, _num_tensorcores_per_chip())
    x_p = x if b_pad == B else jnp.pad(x, ((0, b_pad - B), (0, 0)))

    # Honest (unpadded) cost estimate — advisory only.
    flops = 2 * B * (inp_dim * hid + hid * hid2 + hid2 * out_dim)
    bytes_accessed = 4 * (
        B * inp_dim + B * out_dim
        + inp_dim * hid + hid * hid2 + hid2 * out_dim
        + hid + hid2 + out_dim)

    out = pl.pallas_call(
        _mlp3_kernel,
        out_shape=jax.ShapeDtypeStruct((b_pad, out_dim), jnp.float32),
        grid=(n_tiles,),
        in_specs=[
            pl.BlockSpec((tb, inp_dim), lambda i: (i, 0)),   # x: streamed over batch
            pl.BlockSpec((inp_dim, hid), lambda i: (0, 0)),  # weights/biases: resident
            pl.BlockSpec((1, hid), lambda i: (0, 0)),
            pl.BlockSpec((hid, hid2), lambda i: (0, 0)),
            pl.BlockSpec((1, hid2), lambda i: (0, 0)),
            pl.BlockSpec((hid2, out_dim), lambda i: (0, 0)),
            pl.BlockSpec((1, out_dim), lambda i: (0, 0)),
        ],
        out_specs=pl.BlockSpec((tb, out_dim), lambda i: (i, 0)),
        compiler_params=pltpu.CompilerParams(
            dimension_semantics=("parallel",),   # batch tiles shard across v7x cores
        ),
        cost_estimate=pl.CostEstimate(
            flops=flops, transcendentals=0, bytes_accessed=bytes_accessed),
    )(x_p, w1t, b1, w2t, b2, w3t, b3)

    return out if b_pad == B else out[:B]


def init_params(key, inp_dim, hidden_dim, out_dim):
    """Deterministic init mimicking nn.Linear's U(-1/sqrt(fan_in), 1/sqrt(fan_in))."""
    ks = jax.random.split(key, 6)

    def linear(kw, kb, fan_in, fan_out):
        bound = 1.0 / jnp.sqrt(jnp.float32(fan_in))
        # Stored transposed: [fan_in, fan_out]  (PyTorch stores [fan_out, fan_in]).
        w_t = jax.random.uniform(kw, (fan_in, fan_out), jnp.float32, -bound, bound)
        b = jax.random.uniform(kb, (1, fan_out), jnp.float32, -bound, bound)
        return w_t, b

    w1t, b1 = linear(ks[0], ks[1], inp_dim, hidden_dim)
    w2t, b2 = linear(ks[2], ks[3], hidden_dim, hidden_dim // 2)
    w3t, b3 = linear(ks[4], ks[5], hidden_dim // 2, out_dim)
    return {"w1t": w1t, "b1": b1, "w2t": w2t, "b2": b2, "w3t": w3t, "b3": b3}


def _reference(x, p):
    h1 = jnp.maximum(x @ p["w1t"] + p["b1"], 0.0)
    h2 = jnp.maximum(h1 @ p["w2t"] + p["b2"], 0.0)
    return h2 @ p["w3t"] + p["b3"]


if __name__ == "__main__":
    inp_dim, hidden_dim, out_dim = 32, 32, 8

    key = jax.random.PRNGKey(0)
    k_x, k_p, k_x2, k_x3 = jax.random.split(key, 4)
    params = init_params(k_p, inp_dim, hidden_dim, out_dim)

    # Small primary check (single batch tile, no padding at all).
    batch = 8
    x = jax.random.normal(k_x, (batch, inp_dim), jnp.float32)
    out = jax.block_until_ready(simple_nn3_forward(x, params))
    ref = _reference(x, params)
    assert out.shape == (batch, out_dim)
    assert jnp.allclose(out, ref, atol=1e-4, rtol=1e-4)

    # Medium check: non-power-of-two batch, balanced tiling (exercises tb not a
    # multiple of 128 and, on v7x, the 2-tile parallel grid).
    batch2 = 520
    x2 = jax.random.normal(k_x2, (batch2, inp_dim), jnp.float32)
    out2 = jax.block_until_ready(simple_nn3_forward(x2, params))
    ref2 = _reference(x2, params)
    assert out2.shape == (batch2, out_dim)
    assert jnp.allclose(out2, ref2, atol=1e-4, rtol=1e-4)

    # Large check: batch > _TB_MAX -> multi-step grid, pipelining, and remainder-row
    # padding/slicing.
    batch3 = 1030
    x3 = jax.random.normal(k_x3, (batch3, inp_dim), jnp.float32)
    out3 = jax.block_until_ready(simple_nn3_forward(x3, params))
    ref3 = _reference(x3, params)
    assert out3.shape == (batch3, out_dim)
    assert jnp.allclose(out3, ref3, atol=1e-4, rtol=1e-4)

    print("KERNEL_OK")
</pallas_src>

<mosaic_0001>
module attributes {stable_mosaic.version = 11 : i64} {
  func.func @_mlp3_kernel(%arg0: i32, %arg1: memref<8x32xf32, #tpu.memory_space<vmem>>, %arg2: memref<32x32xf32, #tpu.memory_space<vmem>>, %arg3: memref<1x32xf32, #tpu.memory_space<vmem>>, %arg4: memref<32x16xf32, #tpu.memory_space<vmem>>, %arg5: memref<1x16xf32, #tpu.memory_space<vmem>>, %arg6: memref<16x8xf32, #tpu.memory_space<vmem>>, %arg7: memref<1x8xf32, #tpu.memory_space<vmem>>, %arg8: memref<8x8xf32, #tpu.memory_space<vmem>>) attributes {dimension_semantics = [#tpu.dimension_semantics<parallel>], iteration_bounds = array<i64: 1>, scalar_prefetch = 0 : i64, scratch_operands = 0 : i64, tpu.core_type = #tpu.core_type<tc>, window_params = [{transform_indices = @transform_0, window_bounds = array<i64: 8, 32>}, {pipeline_mode = #tpu.pipeline_mode<synchronous>, transform_indices = @transform_1, window_bounds = array<i64: 32, 32>}, {pipeline_mode = #tpu.pipeline_mode<synchronous>, transform_indices = @transform_2, window_bounds = array<i64: 1, 32>}, {pipeline_mode = #tpu.pipeline_mode<synchronous>, transform_indices = @transform_3, window_bounds = array<i64: 32, 16>}, {pipeline_mode = #tpu.pipeline_mode<synchronous>, transform_indices = @transform_4, window_bounds = array<i64: 1, 16>}, {pipeline_mode = #tpu.pipeline_mode<synchronous>, transform_indices = @transform_5, window_bounds = array<i64: 16, 8>}, {pipeline_mode = #tpu.pipeline_mode<synchronous>, transform_indices = @transform_6, window_bounds = array<i64: 1, 8>}, {transform_indices = @transform_7, window_bounds = array<i64: 8, 8>}]} {
    %c0 = arith.constant 0 : index
    %c0_0 = arith.constant 0 : index
    %0 = vector.load %arg1[%c0, %c0_0] : memref<8x32xf32, #tpu.memory_space<vmem>>, vector<8x32xf32>
    %c0_1 = arith.constant 0 : index
    %c0_2 = arith.constant 0 : index
    %1 = vector.load %arg2[%c0_1, %c0_2] : memref<32x32xf32, #tpu.memory_space<vmem>>, vector<32x32xf32>
    %cst = arith.constant dense<0.000000e+00> : vector<8x32xf32>
    %2 = tpu.matmul %0, %1, %cst {dimension_numbers = #tpu.dot_dimension_numbers<[1], [0], [0], [1], [0, 0, 1, 1], [], []>} : vector<8x32xf32>, vector<32x32xf32>, vector<8x32xf32> -> vector<8x32xf32>
    %c0_3 = arith.constant 0 : index
    %c0_4 = arith.constant 0 : index
    %3 = vector.load %arg3[%c0_3, %c0_4] : memref<1x32xf32, #tpu.memory_space<vmem>>, vector<1x32xf32>
    %4 = vector.broadcast %3 : vector<1x32xf32> to vector<8x32xf32>
    %5 = arith.addf %2, %4 : vector<8x32xf32>
    %cst_5 = arith.constant 0.000000e+00 : f32
    %6 = vector.broadcast %cst_5 : f32 to vector<8x32xf32>
    %7 = arith.maximumf %5, %6 : vector<8x32xf32>
    %c0_6 = arith.constant 0 : index
    %c0_7 = arith.constant 0 : index
    %8 = vector.load %arg4[%c0_6, %c0_7] : memref<32x16xf32, #tpu.memory_space<vmem>>, vector<32x16xf32>
    %cst_8 = arith.constant dense<0.000000e+00> : vector<8x16xf32>
    %9 = tpu.matmul %7, %8, %cst_8 {dimension_numbers = #tpu.dot_dimension_numbers<[1], [0], [0], [1], [0, 0, 1, 1], [], []>} : vector<8x32xf32>, vector<32x16xf32>, vector<8x16xf32> -> vector<8x16xf32>
    %c0_9 = arith.constant 0 : index
    %c0_10 = arith.constant 0 : index
    %10 = vector.load %arg5[%c0_9, %c0_10] : memref<1x16xf32, #tpu.memory_space<vmem>>, vector<1x16xf32>
    %11 = vector.broadcast %10 : vector<1x16xf32> to vector<8x16xf32>
    %12 = arith.addf %9, %11 : vector<8x16xf32>
    %cst_11 = arith.constant 0.000000e+00 : f32
    %13 = vector.broadcast %cst_11 : f32 to vector<8x16xf32>
    %14 = arith.maximumf %12, %13 : vector<8x16xf32>
    %c0_12 = arith.constant 0 : index
    %c0_13 = arith.constant 0 : index
    %15 = vector.load %arg6[%c0_12, %c0_13] : memref<16x8xf32, #tpu.memory_space<vmem>>, vector<16x8xf32>
    %cst_14 = arith.constant dense<0.000000e+00> : vector<8x8xf32>
    %16 = tpu.matmul %14, %15, %cst_14 {dimension_numbers = #tpu.dot_dimension_numbers<[1], [0], [0], [1], [0, 0, 1, 1], [], []>} : vector<8x16xf32>, vector<16x8xf32>, vector<8x8xf32> -> vector<8x8xf32>
    %c0_15 = arith.constant 0 : index
    %c0_16 = arith.constant 0 : index
    %17 = vector.load %arg7[%c0_15, %c0_16] : memref<1x8xf32, #tpu.memory_space<vmem>>, vector<1x8xf32>
    %18 = vector.broadcast %17 : vector<1x8xf32> to vector<8x8xf32>
    %19 = arith.addf %16, %18 : vector<8x8xf32>
    %c0_17 = arith.constant 0 : index
    %c0_18 = arith.constant 0 : index
    %20 = vector.load %arg8[%c0_17, %c0_18] : memref<8x8xf32, #tpu.memory_space<vmem>>, vector<8x8xf32>
    tpu.vector_store %arg8[%c0_17, %c0_18], %19 {strides = array<i32>} : memref<8x8xf32, #tpu.memory_space<vmem>>, vector<8x8xf32>,
    return
  }
  func.func @transform_0(%arg0: i32) -> (i32, i32) {
    %c0_i32 = arith.constant 0 : i32
    %c0_i32_0 = arith.constant 0 : i32
    return %arg0, %c0_i32 : i32, i32
  }
  func.func @transform_1(%arg0: i32) -> (i32, i32) {
    %c0_i32 = arith.constant 0 : i32
    %c0_i32_0 = arith.constant 0 : i32
    %c0_i32_1 = arith.constant 0 : i32
    return %c0_i32, %c0_i32_0 : i32, i32
  }
  func.func @transform_2(%arg0: i32) -> (i32, i32) {
    %c0_i32 = arith.constant 0 : i32
    %c0_i32_0 = arith.constant 0 : i32
    %c0_i32_1 = arith.constant 0 : i32
    return %c0_i32, %c0_i32_0 : i32, i32
  }
  func.func @transform_3(%arg0: i32) -> (i32, i32) {
    %c0_i32 = arith.constant 0 : i32
    %c0_i32_0 = arith.constant 0 : i32
    %c0_i32_1 = arith.constant 0 : i32
    return %c0_i32, %c0_i32_0 : i32, i32
  }
  func.func @transform_4(%arg0: i32) -> (i32, i32) {
    %c0_i32 = arith.constant 0 : i32
    %c0_i32_0 = arith.constant 0 : i32
    %c0_i32_1 = arith.constant 0 : i32
    return %c0_i32, %c0_i32_0 : i32, i32
  }
  func.func @transform_5(%arg0: i32) -> (i32, i32) {
    %c0_i32 = arith.constant 0 : i32
    %c0_i32_0 = arith.constant 0 : i32
    %c0_i32_1 = arith.constant 0 : i32
    return %c0_i32, %c0_i32_0 : i32, i32
  }
  func.func @transform_6(%arg0: i32) -> (i32, i32) {
    %c0_i32 = arith.constant 0 : i32
    %c0_i32_0 = arith.constant 0 : i32
    %c0_i32_1 = arith.constant 0 : i32
    return %c0_i32, %c0_i32_0 : i32, i32
  }
  func.func @transform_7(%arg0: i32) -> (i32, i32) {
    %c0_i32 = arith.constant 0 : i32
    %c0_i32_0 = arith.constant 0 : i32
    return %arg0, %c0_i32 : i32, i32
  }
}

</mosaic_0001>

<bundles_post_ra>
// kernel: tpu_custom_call.1
= control target key start
LH: loop header
LB: loop body
LE: loop exit
PB: predicated region body
PF: predicated region fallthrough
CT: control target
= control target key end

     0   :  { %s260_s0 = inlined_call_operand.vmem [shape: f32[8,32], index: 0, kind: input, shape index: {}]   ;;  %s261_s1 = inlined_call_operand.vmem [shape: f32[32,32], index: 1, kind: input, shape index: {}]   ;;  %s262_s2 = inlined_call_operand.vmem [shape: f32[1,32], index: 2, kind: input, shape index: {}]   ;;  %s263_s3 = inlined_call_operand.vmem [shape: f32[32,16], index: 3, kind: input, shape index: {}]   ;;  %s264_s4 = inlined_call_operand.vmem [shape: f32[1,16], index: 4, kind: input, shape index: {}]   ;;  %s265_s5 = inlined_call_operand.vmem [shape: f32[16,8], index: 5, kind: input, shape index: {}]   ;;  %s266_s6 = inlined_call_operand.vmem [shape: f32[1,8], index: 6, kind: input, shape index: {}]   ;;  %s267_s7 = inlined_call_operand.hbm [shape: f32[8,8], index: 7, kind: output, shape index: {}]  }
   0x1   :  { %v31_v0 = vld [vmem:[%s261_s1 + $0x18] sm:$0xff]  ;;  %v30_v1 = vld [vmem:[%s261_s1 + $0x10] sm:$0xff]  ;;  %v29_v3 = vld [vmem:[%s261_s1 + $0x8] sm:$0xff] }
   0x2   :  { %52 = vmatpush.msra.mxu0 %v31_v0  ;;  %v64_v2 = vld [vmem:[%s263_s3 + $0x18] sm:$0xff] }
   0x3   :  { %84 = vmatpush.msra.mxu1 %v64_v2 }
   0x4   :  { %53 = vmatpush.msra.mxu0 %v30_v1 }
   0x5   :  { %12 = vsyncpa [#allocation3], 0  ;;  %v28_v4 = vld [vmem:[%s261_s1] sm:$0xff]  ;;  %vm36_vm0 = vcmask 261120   ;;  %v63_v6 = vld [vmem:[%s263_s3 + $0x10] sm:$0xff]  ;;  %vm99_vm1 = vcmask 130048  }
   0x6   :  { %54 = vmatpush.msra.mxu0 %v29_v3  ;;  %v27_v5 = vld [vmem:[%s260_s0] sm:$0xff]  ;;  %85 = vmatpush.msra.mxu1 %v63_v6  ;;  %v62_v7 = vld [vmem:[%s263_s3 + $0x8] sm:$0xff]  ;;  %s174_s25 = smov [#allocation2]   ;;  %vm123_vm2 = vcmask 64512  }
   0x7   :  { %v61_v8 = vld [vmem:[%s263_s3] sm:$0xff]  ;;  %v94_v13 = vld [vmem:[%s265_s5 + $0x8] sm:$0xff]  ;;  %s130_s26 = sshll.u32 %s174_s25, 4  ;;  %s131_s26 = int_to_ptr.vmem [resolvable:$true] %s130_s26 }
   0x8   :  { %55 = vmatpush.msra.mxu0 %v28_v4  ;;  %86 = vmatpush.msra.mxu1 %v62_v7  ;;  %v145_v9 = vld [vmem:[%s262_s2] ss:$0 sm:$0xff] }
   0x9   :  { %141 = vmatmul.msk.f32.vlgmr.msra.gmra.mxu0 %vm36_vm0, %v27_v5  ;;  %117 = vmatpush.msra.mxu2 %v94_v13  ;;  %v93_v14 = vld [vmem:[%s265_s5] sm:$0xff]  ;;  %s132_s5 = sshll.u32 %s267_s7, 4  ;;  %s133_s5 = int_to_ptr.hbm [resolvable:$true] %s132_s5 }
   0xa   :  { %87 = vmatpush.msra.mxu1 %v61_v8  ;;  %v146_v15 = vld [vmem:[%s264_s4] ss:$0 sm:$0xff] }
   0xb   :  { %118 = vmatpush.msra.mxu2 %v93_v14  ;;  %v147_v19 = vld [vmem:[%s266_s6] ss:$0 sm:$0xff] }
  0x86   :  { %v57_v10 = vpop.f32.mrf.mxu0 }
  0x87   :  { %v58_v11 = vadd.f32 %v145_v9, %v57_v10 }
  0x89   :  { %v60_v12 = vmax.f32 %v58_v11, 0.0 }
  0x8b   :  { %142 = vmatmul.msk.f32.vlgmr.msra.gmra.mxu1 %vm36_vm0, %v60_v12 }
 0x108   :  { %v89_v16 = vpop.f32.mrf.mxu1 }
 0x109   :  { %v90_v17 = vadd.f32 %v146_v15, %v89_v16 }
 0x10b   :  { %v92_v18 = vmax.f32 %v90_v17, 0.0 }
 0x10d   :  { %143 = vmatmul.msk.f32.vlgmr.msra.gmra.mxu2 %vm99_vm1, %v92_v18 }
 0x190   :  { %v120_v20 = vpop.f32.mrf.mxu2 }
 0x191   :  { %v121_v21 = vadd.f32 %v147_v19, %v120_v20 }
 0x193   :  { %124 = vst.msk [vmem:[#allocation2] sm:$0xff] %vm123_vm2, %v121_v21 }
 0x194   :  { %135 = dma.vmem_to_hbm [thread:$0]  %s131_s26, 128, %s133_s5, [#allocation3]  }
 0x195   :  { %172 = dma.done.wait [#allocation3], 128  }
 0x196   :  { %173 = vsyncadd [#allocation3], 4294967168 }
 0x197   :  { %140 = vsyncpa [#allocation3], 1 }

</bundles_post_ra>
